<compile_context>
chip_gen: v5e
topology: v5e:2x2
jax: 0.10.0
libtpu: 0.0.40
codegen_flags: <defaults>
</compile_context>

<pallas_src>
import functools
import math

import jax
import jax.numpy as jnp
from jax.experimental import pallas as pl
from jax.experimental.pallas import tpu as pltpu


def _round_up(x, m):
    return ((x + m - 1) // m) * m


def _patch_embed_kernel(p_ref, w_ref, b_ref, g_ref, beta_ref, o_ref, *,
                        true_d, inv_d):
    # p_ref:    (TILE_N, P)      im2col patches (compute dtype)
    # w_ref:    (P, D_pad)       flattened conv weight (compute dtype)
    # b_ref:    (1, D_pad)       conv bias (f32, zero in padded cols)
    # g_ref:    (1, D_pad)       layernorm weight (f32, zero in padded cols)
    # beta_ref: (1, D_pad)       layernorm bias (f32, zero in padded cols)
    # o_ref:    (TILE_N, D_pad)  output (compute/out dtype)
    x = jnp.dot(p_ref[...], w_ref[...],
                preferred_element_type=jnp.float32)            # (TILE_N, D_pad), MXU
    x = x + b_ref[...]                                          # padded cols stay 0

    # Two-pass LayerNorm over the TRUE embed_dim.  Before centering, the padded
    # columns are exactly zero (weights & bias zero-padded), so the row sum is
    # exact; after centering they would become -mean, so mask them out of the
    # variance (avoids the E[x^2]-E[x]^2 cancellation flagged in review).
    mean = jnp.sum(x, axis=-1, keepdims=True) * inv_d
    xc = x - mean
    if true_d != x.shape[-1]:
        col = jax.lax.broadcasted_iota(jnp.int32, x.shape, 1)
        xc = jnp.where(col < true_d, xc, 0.0)
    var = jnp.sum(xc * xc, axis=-1, keepdims=True) * inv_d
    y = xc * jax.lax.rsqrt(var + 1e-5) * g_ref[...] + beta_ref[...]
    o_ref[...] = y.astype(o_ref.dtype)


def overlap_patch_embed(x_nchw, conv_w, conv_b, ln_w, ln_b, *,
                        patch_size, stride,
                        compute_dtype=jnp.bfloat16, out_dtype=None,
                        tile_n=4096):
    """x_nchw: (B, C, H, W); conv_w: (D, C, K, K). Returns (tokens (B, N, D), H_out, W_out)."""
    B, C, H, W = x_nchw.shape
    D = conv_w.shape[0]
    K = patch_size
    pad = K // 2
    H_out = (H + 2 * pad - K) // stride + 1
    W_out = (W + 2 * pad - K) // stride + 1
    N = H_out * W_out
    P = C * K * K                       # contraction length (NOT padded in HBM)
    BN = B * N                          # flattened token count

    if out_dtype is None:
        out_dtype = compute_dtype

    D_pad = _round_up(D, 128)           # lane-dense output / MXU N-dim
    assert tile_n % 128 == 0
    tile_n = min(tile_n, _round_up(BN, 128))

    # VMEM budget: double-buffered patch tile + output tile + resident weights.
    cbytes = jnp.dtype(compute_dtype).itemsize
    obytes = jnp.dtype(out_dtype).itemsize

    def _est_vmem(tn):
        return (2 * tn * P * cbytes          # patches (double-buffered)
                + 2 * tn * D_pad * obytes    # output  (double-buffered)
                + P * D_pad * cbytes         # weight (resident)
                + 3 * D_pad * 4)             # bias / gamma / beta (f32)

    # Keep within ~24 MiB so the same tile works on v5e/v6e/v7x.
    while tile_n > 256 and _est_vmem(tile_n) > 24 * 1024 * 1024:
        tile_n //= 2

    BN_pad = _round_up(BN, tile_n)
    n_tiles = BN_pad // tile_n

    # --- glue: im2col with P trailing (kh, kw, C order), built directly in the
    #     compute dtype.  Only the *small* input is transposed (NCHW -> NHWC);
    #     the big (B*N, P) slab is written once, already in kernel layout.
    xp = jnp.pad(x_nchw, ((0, 0), (0, 0), (pad, pad), (pad, pad)))
    xpt = jnp.transpose(xp, (0, 2, 3, 1)).astype(compute_dtype)   # (B, H+2p, W+2p, C)
    slices = []
    for ki in range(K):
        for kj in range(K):
            slices.append(
                xpt[:, ki:ki + stride * (H_out - 1) + 1:stride,
                       kj:kj + stride * (W_out - 1) + 1:stride, :])   # (B, Ho, Wo, C)
    patches = jnp.stack(slices, axis=3)                    # (B, Ho, Wo, K*K, C)
    patches = patches.reshape(BN, P)                        # contiguous reshape
    patches = jnp.pad(patches, ((0, BN_pad - BN), (0, 0)))  # token-pad only

    # Weight flattened in matching (kh, kw, C) order; only D is zero-padded.
    w_flat = conv_w.transpose(2, 3, 1, 0).reshape(P, D).astype(jnp.float32)
    w_flat = jnp.pad(w_flat, ((0, 0), (0, D_pad - D))).astype(compute_dtype)
    b2 = jnp.pad(conv_b.astype(jnp.float32).reshape(1, D), ((0, 0), (0, D_pad - D)))
    g2 = jnp.pad(ln_w.astype(jnp.float32).reshape(1, D), ((0, 0), (0, D_pad - D)))
    be2 = jnp.pad(ln_b.astype(jnp.float32).reshape(1, D), ((0, 0), (0, D_pad - D)))

    kernel = functools.partial(_patch_embed_kernel,
                               true_d=D, inv_d=1.0 / float(D))

    cp_kwargs = dict(dimension_semantics=("parallel",))
    est = _est_vmem(tile_n)
    if est > 12 * 1024 * 1024:
        # v5e's scoped-VMEM default is 16 MiB; raise it (with headroom) so large
        # tiles compile there too.
        cp_kwargs["vmem_limit_bytes"] = int(est * 1.5)

    out = pl.pallas_call(
        kernel,
        out_shape=jax.ShapeDtypeStruct((BN_pad, D_pad), out_dtype),
        grid_spec=pltpu.PrefetchScalarGridSpec(
            num_scalar_prefetch=0,
            grid=(n_tiles,),
            in_specs=[
                pl.BlockSpec((tile_n, P), lambda t: (t, 0)),     # P = full dim (no HBM pad)
                pl.BlockSpec((P, D_pad), lambda t: (0, 0)),      # resident weight
                pl.BlockSpec((1, D_pad), lambda t: (0, 0)),
                pl.BlockSpec((1, D_pad), lambda t: (0, 0)),
                pl.BlockSpec((1, D_pad), lambda t: (0, 0)),
            ],
            out_specs=pl.BlockSpec((tile_n, D_pad), lambda t: (t, 0)),
        ),
        compiler_params=pltpu.CompilerParams(**cp_kwargs),
    )(patches, w_flat, b2, g2, be2)

    # Keep module semantics: return the exact (B, N, D) tokens.
    tokens = out[:BN, :D].reshape(B, N, D)
    return tokens, H_out, W_out
    # TODO(synk): biggest remaining lever — in-kernel im2col (padded NHWC input via
    # memory_space=pl.ANY + manual make_async_copy of a row band per tile), which
    # removes the slab write+read and reads each input pixel once (~(K/stride)^2
    # less input traffic). Also optionally return the padded (BN_pad, D_pad) slab
    # and let the consumer slice lazily to skip the final full-pass copy.


def reference(x_nchw, conv_w, conv_b, ln_w, ln_b, *, patch_size, stride):
    """Pure-JAX reference mirroring the PyTorch forward (f32)."""
    pad = patch_size // 2
    y = jax.lax.conv_general_dilated(
        x_nchw.astype(jnp.float32), conv_w.astype(jnp.float32),
        window_strides=(stride, stride),
        padding=((pad, pad), (pad, pad)),
        dimension_numbers=("NCHW", "OIHW", "NCHW"))
    y = y + conv_b.reshape(1, -1, 1, 1)
    B, D, H, W = y.shape
    tok = y.reshape(B, D, H * W).transpose(0, 2, 1)            # (B, N, D)
    mean = jnp.mean(tok, axis=-1, keepdims=True)
    var = jnp.mean((tok - mean) ** 2, axis=-1, keepdims=True)
    tok = (tok - mean) * jax.lax.rsqrt(var + 1e-5)
    tok = tok * ln_w + ln_b
    return tok, H, W


if __name__ == "__main__":
    # Small config consistent with the module (patch_size > stride).
    B, C, H, W = 2, 4, 16, 16
    patch_size, stride, embed_dim = 7, 4, 32

    key = jax.random.PRNGKey(0)
    kx, kw = jax.random.split(key)
    x = jax.random.normal(kx, (B, C, H, W), dtype=jnp.float32)

    # Deterministic parameter init matching _init_weights.
    fan_out = patch_size * patch_size * embed_dim
    conv_w = jax.random.normal(kw, (embed_dim, C, patch_size, patch_size),
                               dtype=jnp.float32) * math.sqrt(2.0 / fan_out)
    conv_b = jnp.zeros((embed_dim,), jnp.float32)
    ln_w = jnp.ones((embed_dim,), jnp.float32)
    ln_b = jnp.zeros((embed_dim,), jnp.float32)

    ref, Ho_r, Wo_r = reference(x, conv_w, conv_b, ln_w, ln_b,
                                patch_size=patch_size, stride=stride)

    # 1) f32 compute path — tight numerical check against the reference.
    out32, Ho, Wo = overlap_patch_embed(x, conv_w, conv_b, ln_w, ln_b,
                                        patch_size=patch_size, stride=stride,
                                        compute_dtype=jnp.float32)
    out32 = jax.block_until_ready(out32)
    assert (Ho, Wo) == (Ho_r, Wo_r) == (H // stride, W // stride)
    assert out32.shape == (B, Ho * Wo, embed_dim)
    assert jnp.allclose(out32, ref, atol=1e-4, rtol=1e-4)

    # 2) bf16 fast path (default) — bf16 slab, bf16 output, f32 accumulation.
    out_bf, _, _ = overlap_patch_embed(x, conv_w, conv_b, ln_w, ln_b,
                                       patch_size=patch_size, stride=stride,
                                       compute_dtype=jnp.bfloat16)
    out_bf = jax.block_until_ready(out_bf)
    assert out_bf.shape == (B, Ho * Wo, embed_dim)
    assert jnp.allclose(out_bf.astype(jnp.float32), ref, atol=3e-2, rtol=3e-2)

    print("KERNEL_OK")
</pallas_src>

<mosaic_0001>
module attributes {stable_mosaic.version = 11 : i64} {
  func.func @_patch_embed_kernel(%arg0: i32, %arg1: memref<128x196xf32, #tpu.memory_space<vmem>>, %arg2: memref<196x128xf32, #tpu.memory_space<vmem>>, %arg3: memref<1x128xf32, #tpu.memory_space<vmem>>, %arg4: memref<1x128xf32, #tpu.memory_space<vmem>>, %arg5: memref<1x128xf32, #tpu.memory_space<vmem>>, %arg6: memref<128x128xf32, #tpu.memory_space<vmem>>) attributes {dimension_semantics = [#tpu.dimension_semantics<parallel>], iteration_bounds = array<i64: 1>, scalar_prefetch = 0 : i64, scratch_operands = 0 : i64, tpu.core_type = #tpu.core_type<tc>, window_params = [{transform_indices = @transform_0, window_bounds = array<i64: 128, 196>}, {pipeline_mode = #tpu.pipeline_mode<synchronous>, transform_indices = @transform_1, window_bounds = array<i64: 196, 128>}, {pipeline_mode = #tpu.pipeline_mode<synchronous>, transform_indices = @transform_2, window_bounds = array<i64: 1, 128>}, {pipeline_mode = #tpu.pipeline_mode<synchronous>, transform_indices = @transform_3, window_bounds = array<i64: 1, 128>}, {pipeline_mode = #tpu.pipeline_mode<synchronous>, transform_indices = @transform_4, window_bounds = array<i64: 1, 128>}, {transform_indices = @transform_5, window_bounds = array<i64: 128, 128>}]} {
    %c0 = arith.constant 0 : index
    %c0_0 = arith.constant 0 : index
    %0 = vector.load %arg1[%c0, %c0_0] : memref<128x196xf32, #tpu.memory_space<vmem>>, vector<128x196xf32>
    %c0_1 = arith.constant 0 : index
    %c0_2 = arith.constant 0 : index
    %1 = vector.load %arg2[%c0_1, %c0_2] : memref<196x128xf32, #tpu.memory_space<vmem>>, vector<196x128xf32>
    %cst = arith.constant dense<0.000000e+00> : vector<128x128xf32>
    %2 = tpu.matmul %0, %1, %cst {dimension_numbers = #tpu.dot_dimension_numbers<[1], [0], [0], [1], [0, 0, 1, 1], [], []>} : vector<128x196xf32>, vector<196x128xf32>, vector<128x128xf32> -> vector<128x128xf32>
    %c0_3 = arith.constant 0 : index
    %c0_4 = arith.constant 0 : index
    %3 = vector.load %arg3[%c0_3, %c0_4] : memref<1x128xf32, #tpu.memory_space<vmem>>, vector<1x128xf32>
    %4 = vector.broadcast %3 : vector<1x128xf32> to vector<128x128xf32>
    %5 = arith.addf %2, %4 : vector<128x128xf32>
    %cst_5 = arith.constant dense<0.000000e+00> : vector<128xf32>
    %6 = vector.multi_reduction <add>, %5, %cst_5 [1] : vector<128x128xf32> to vector<128xf32>
    %7 = vector.shape_cast %6 : vector<128xf32> to vector<128x1xf32>
    %cst_6 = arith.constant 3.125000e-02 : f32
    %8 = vector.broadcast %cst_6 : f32 to vector<128x1xf32>
    %9 = arith.mulf %7, %8 : vector<128x1xf32>
    %10 = vector.broadcast %9 : vector<128x1xf32> to vector<128x128xf32>
    %11 = arith.subf %5, %10 : vector<128x128xf32>
    %12 = tpu.iota {dimensions = array<i32: 1>} : vector<128x128xi32>
    %c32_i32 = arith.constant 32 : i32
    %13 = vector.broadcast %c32_i32 : i32 to vector<128x128xi32>
    %14 = arith.cmpi slt, %12, %13 : vector<128x128xi32>
    %cst_7 = arith.constant 0.000000e+00 : f32
    %15 = vector.broadcast %cst_7 : f32 to vector<128x128xf32>
    %16 = arith.select %14, %11, %15 : vector<128x128xi1>, vector<128x128xf32>
    %17 = arith.mulf %16, %16 : vector<128x128xf32>
    %cst_8 = arith.constant dense<0.000000e+00> : vector<128xf32>
    %18 = vector.multi_reduction <add>, %17, %cst_8 [1] : vector<128x128xf32> to vector<128xf32>
    %19 = vector.shape_cast %18 : vector<128xf32> to vector<128x1xf32>
    %cst_9 = arith.constant 3.125000e-02 : f32
    %20 = vector.broadcast %cst_9 : f32 to vector<128x1xf32>
    %21 = arith.mulf %19, %20 : vector<128x1xf32>
    %cst_10 = arith.constant 9.99999974E-6 : f32
    %22 = vector.broadcast %cst_10 : f32 to vector<128x1xf32>
    %23 = arith.addf %21, %22 : vector<128x1xf32>
    %24 = math.rsqrt %23 : vector<128x1xf32>
    %25 = vector.broadcast %24 : vector<128x1xf32> to vector<128x128xf32>
    %26 = arith.mulf %16, %25 : vector<128x128xf32>
    %c0_11 = arith.constant 0 : index
    %c0_12 = arith.constant 0 : index
    %27 = vector.load %arg4[%c0_11, %c0_12] : memref<1x128xf32, #tpu.memory_space<vmem>>, vector<1x128xf32>
    %28 = vector.broadcast %27 : vector<1x128xf32> to vector<128x128xf32>
    %29 = arith.mulf %26, %28 : vector<128x128xf32>
    %c0_13 = arith.constant 0 : index
    %c0_14 = arith.constant 0 : index
    %30 = vector.load %arg5[%c0_13, %c0_14] : memref<1x128xf32, #tpu.memory_space<vmem>>, vector<1x128xf32>
    %31 = vector.broadcast %30 : vector<1x128xf32> to vector<128x128xf32>
    %32 = arith.addf %29, %31 : vector<128x128xf32>
    %c0_15 = arith.constant 0 : index
    %c0_16 = arith.constant 0 : index
    %33 = vector.load %arg6[%c0_15, %c0_16] : memref<128x128xf32, #tpu.memory_space<vmem>>, vector<128x128xf32>
    tpu.vector_store %arg6[%c0_15, %c0_16], %32 {strides = array<i32>} : memref<128x128xf32, #tpu.memory_space<vmem>>, vector<128x128xf32>,
    return
  }
  func.func @transform_0(%arg0: i32) -> (i32, i32) {
    %c0_i32 = arith.constant 0 : i32
    %c0_i32_0 = arith.constant 0 : i32
    return %arg0, %c0_i32 : i32, i32
  }
  func.func @transform_1(%arg0: i32) -> (i32, i32) {
    %c0_i32 = arith.constant 0 : i32
    %c0_i32_0 = arith.constant 0 : i32
    %c0_i32_1 = arith.constant 0 : i32
    return %c0_i32, %c0_i32_0 : i32, i32
  }
  func.func @transform_2(%arg0: i32) -> (i32, i32) {
    %c0_i32 = arith.constant 0 : i32
    %c0_i32_0 = arith.constant 0 : i32
    %c0_i32_1 = arith.constant 0 : i32
    return %c0_i32, %c0_i32_0 : i32, i32
  }
  func.func @transform_3(%arg0: i32) -> (i32, i32) {
    %c0_i32 = arith.constant 0 : i32
    %c0_i32_0 = arith.constant 0 : i32
    %c0_i32_1 = arith.constant 0 : i32
    return %c0_i32, %c0_i32_0 : i32, i32
  }
  func.func @transform_4(%arg0: i32) -> (i32, i32) {
    %c0_i32 = arith.constant 0 : i32
    %c0_i32_0 = arith.constant 0 : i32
    %c0_i32_1 = arith.constant 0 : i32
    return %c0_i32, %c0_i32_0 : i32, i32
  }
  func.func @transform_5(%arg0: i32) -> (i32, i32) {
    %c0_i32 = arith.constant 0 : i32
    %c0_i32_0 = arith.constant 0 : i32
    return %arg0, %c0_i32 : i32, i32
  }
}

</mosaic_0001>

<bundles_post_ra>
// kernel: tpu_custom_call.1
= control target key start
LH: loop header
LB: loop body
LE: loop exit
PB: predicated region body
PF: predicated region fallthrough
CT: control target
= control target key end

     0   :  { %vm131_vm0 = vcmask 1043456   ;;  %s1331_s0 = inlined_call_operand.vmem [shape: f32[128,196], index: 0, kind: input, shape index: {}]   ;;  %s1332_s1 = inlined_call_operand.vmem [shape: f32[196,128], index: 1, kind: input, shape index: {}]   ;;  %s1333_s2 = inlined_call_operand.vmem [shape: f32[1,128], index: 2, kind: input, shape index: {}]   ;;  %s1334_s3 = inlined_call_operand.vmem [shape: f32[1,128], index: 3, kind: input, shape index: {}]   ;;  %s1335_s4 = inlined_call_operand.vmem [shape: f32[1,128], index: 4, kind: input, shape index: {}]   ;;  %s1336_s5 = inlined_call_operand.hbm [shape: f32[128,128], index: 5, kind: output, shape index: {}]  }
   0x1   :  { %v68_v0 = vld [vmem:[%s1332_s1 + $0x78] sm:$0xff]  ;;  %v77_v1 = vld [vmem:[%s1332_s1 + $0xc0] sm:$0xf]  ;;  %v67_v2 = vld [vmem:[%s1332_s1 + $0x70] sm:$0xff] }
   0x2   :  { %135 = vmatpush.msra.mxu0 %v68_v0  ;;  %695 = vmatpush.msra.mxu2 %v68_v0  ;;  %v76_v3 = vld [vmem:[%s1332_s1 + $0xb8] sm:$0xff]  ;;  %v66_v4 = vld [vmem:[%s1332_s1 + $0x68] sm:$0xff]  ;;  %v75_v5 = vld [vmem:[%s1332_s1 + $0xb0] sm:$0xff] }
   0x3   :  { %678 = vmatpush.msk.msra.mxu1 %vm131_vm0, %v77_v1  ;;  %711 = vmatpush.msk.msra.mxu3 %vm131_vm0, %v77_v1  ;;  %v65_v6 = vld [vmem:[%s1332_s1 + $0x60] sm:$0xff]  ;;  %v74_v7 = vld [vmem:[%s1332_s1 + $0xa8] sm:$0xff]  ;;  %v64_v8 = vld [vmem:[%s1332_s1 + $0x58] sm:$0xff] }
   0x4   :  { %136 = vmatpush.msra.mxu0 %v67_v2  ;;  %696 = vmatpush.msra.mxu2 %v67_v2  ;;  %v73_v9 = vld [vmem:[%s1332_s1 + $0xa0] sm:$0xff]  ;;  %v63_v10 = vld [vmem:[%s1332_s1 + $0x50] sm:$0xff]  ;;  %v72_v11 = vld [vmem:[%s1332_s1 + $0x98] sm:$0xff] }
   0x5   :  { %208 = vmatpush.msra.mxu1 %v76_v3  ;;  %712 = vmatpush.msra.mxu3 %v76_v3  ;;  %v62_v12 = vld [vmem:[%s1332_s1 + $0x48] sm:$0xff]  ;;  %v71_v13 = vld [vmem:[%s1332_s1 + $0x90] sm:$0xff]  ;;  %v61_v14 = vld [vmem:[%s1332_s1 + $0x40] sm:$0xff] }
   0x6   :  { %137 = vmatpush.msra.mxu0 %v66_v4  ;;  %697 = vmatpush.msra.mxu2 %v66_v4 }
   0x7   :  { %209 = vmatpush.msra.mxu1 %v75_v5  ;;  %713 = vmatpush.msra.mxu3 %v75_v5 }
   0x8   :  { %138 = vmatpush.msra.mxu0 %v65_v6  ;;  %698 = vmatpush.msra.mxu2 %v65_v6 }
   0x9   :  { %210 = vmatpush.msra.mxu1 %v74_v7  ;;  %714 = vmatpush.msra.mxu3 %v74_v7 }
   0xa   :  { %139 = vmatpush.msra.mxu0 %v64_v8  ;;  %699 = vmatpush.msra.mxu2 %v64_v8 }
   0xb   :  { %211 = vmatpush.msra.mxu1 %v73_v9  ;;  %715 = vmatpush.msra.mxu3 %v73_v9 }
   0xc   :  { %140 = vmatpush.msra.mxu0 %v63_v10  ;;  %700 = vmatpush.msra.mxu2 %v63_v10 }
   0xd   :  { %212 = vmatpush.msra.mxu1 %v72_v11  ;;  %716 = vmatpush.msra.mxu3 %v72_v11 }
   0xe   :  { %10 = vsyncpa [#allocation3], 0  ;;  %141 = vmatpush.msra.mxu0 %v62_v12  ;;  %701 = vmatpush.msra.mxu2 %v62_v12  ;;  %v70_v15 = vld [vmem:[%s1332_s1 + $0x88] sm:$0xff]  ;;  %v60_v16 = vld [vmem:[%s1332_s1 + $0x38] sm:$0xff]  ;;  %vm82_vm1 = vcmask 556032   ;;  %s666_s10 = sshll.u32 %s1336_s5, 4  ;;  %s667_s10 = int_to_ptr.hbm [resolvable:$true] %s666_s10 }
   0xf   :  { %213 = vmatpush.msra.mxu1 %v71_v13  ;;  %717 = vmatpush.msra.mxu3 %v71_v13  ;;  %v69_v17 = vld [vmem:[%s1332_s1 + $0x80] sm:$0xff]  ;;  %v22_v18 = vld [vmem:[%s1331_s0 + $0x8] sm:$0xff]  ;;  %v59_v19 = vld [vmem:[%s1332_s1 + $0x30] sm:$0xff]  ;;  %s785_s11 = smov 128   ;;  %s786_s12 = smov 8  }
  0x10   :  { %142 = vmatpush.msra.mxu0 %v61_v14  ;;  %702 = vmatpush.msra.mxu2 %v61_v14  ;;  %v58_v20 = vld [vmem:[%s1332_s1 + $0x28] sm:$0xff]  ;;  %v40_v21 = vld [vmem:[%s1331_s0 + $0x98] sm:$0xff]  ;;  %v57_v22 = vld [vmem:[%s1332_s1 + $0x20] sm:$0xff] }
  0x11   :  { %214 = vmatpush.msra.mxu1 %v70_v15  ;;  %718 = vmatpush.msra.mxu3 %v70_v15  ;;  %v56_v23 = vld [vmem:[%s1332_s1 + $0x18] sm:$0xff]  ;;  %v55_v25 = vld [vmem:[%s1332_s1 + $0x10] sm:$0xff]  ;;  %v54_v26 = vld [vmem:[%s1332_s1 + $0x8] sm:$0xff] }
  0x12   :  { %143 = vmatpush.msra.mxu0 %v60_v16  ;;  %703 = vmatpush.msra.mxu2 %v60_v16  ;;  %v24_v24 = vld [vmem:[%s1331_s0 + $0x18] sm:$0xff]  ;;  %v42_v27 = vld [vmem:[%s1331_s0 + $0xa8] sm:$0xff]  ;;  %v53_v28 = vld [vmem:[%s1332_s1] sm:$0xff] }
  0x13   :  { %215 = vmatpush.msra.mxu1 %v69_v17  ;;  %719 = vmatpush.msra.mxu3 %v69_v17  ;;  %v21_v29 = vld [vmem:[%s1331_s0] sm:$0xff]  ;;  %v35_v30 = vld [vmem:[%s1331_s0 + $0x70] sm:$0xff]  ;;  %v26_v31 = vld [vmem:[%s1331_s0 + $0x28] sm:$0xff] }
  0x14   :  { %679 = vmatmul.msk.f32.vlgmr.msra.gmra.mxu1 %vm82_vm1, %v22_v18  ;;  %144 = vmatpush.msra.mxu0 %v59_v19  ;;  %v44_v32 = vld [vmem:[%s1331_s0 + $0xb8] sm:$0xff]  ;;  %v23_v33 = vld [vmem:[%s1331_s0 + $0x10] sm:$0xff]  ;;  %v37_v34 = vld [vmem:[%s1331_s0 + $0x80] sm:$0xff] }
  0x15   :  { %704 = vmatpush.msra.mxu2 %v59_v19  ;;  %688 = vmatmul.msk.f32.vlgmr.msra.gmra.mxu3 %vm82_vm1, %v40_v21  ;;  %v28_v35 = vld [vmem:[%s1331_s0 + $0x38] sm:$0xff]  ;;  %v46_v36 = vld [vmem:[%s1331_s0 + $0xc8] sm:$0xff]  ;;  %v25_v37 = vld [vmem:[%s1331_s0 + $0x20] sm:$0xff] }
  0x16   :  { %145 = vmatpush.msra.mxu0 %v58_v20  ;;  %v39_v38 = vld [vmem:[%s1331_s0 + $0x90] sm:$0xff]  ;;  %v30_v39 = vld [vmem:[%s1331_s0 + $0x48] sm:$0xff]  ;;  %v48_v40 = vld [vmem:[%s1331_s0 + $0xd8] sm:$0xff] }
  0x17   :  { %705 = vmatpush.msra.mxu2 %v58_v20  ;;  %v27_v41 = vld [vmem:[%s1331_s0 + $0x30] sm:$0xff]  ;;  %v41_v42 = vld [vmem:[%s1331_s0 + $0xa0] sm:$0xff]  ;;  %v32_v43 = vld [vmem:[%s1331_s0 + $0x58] sm:$0xff] }
  0x18   :  { %146 = vmatpush.msra.mxu0 %v57_v22  ;;  %v50_v44 = vld [vmem:[%s1331_s0 + $0xe8] sm:$0xff]  ;;  %v29_v45 = vld [vmem:[%s1331_s0 + $0x40] sm:$0xff]  ;;  %v43_v46 = vld [vmem:[%s1331_s0 + $0xb0] sm:$0xff] }
  0x19   :  { %706 = vmatpush.msra.mxu2 %v57_v22  ;;  %v34_v47 = vld [vmem:[%s1331_s0 + $0x68] sm:$0xff]  ;;  %v52_v48 = vld [vmem:[%s1331_s0 + $0xf8] sm:$0xff]  ;;  %v31_v49 = vld [vmem:[%s1331_s0 + $0x50] sm:$0xff] }
  0x1a   :  { %147 = vmatpush.msra.mxu0 %v56_v23  ;;  %v45_v50 = vld [vmem:[%s1331_s0 + $0xc0] sm:$0xff]  ;;  %v36_v51 = vld [vmem:[%s1331_s0 + $0x78] sm:$0xff]  ;;  %v47_v53 = vld [vmem:[%s1331_s0 + $0xd0] sm:$0xff] }
  0x1b   :  { %707 = vmatpush.msra.mxu2 %v56_v23  ;;  %v33_v52 = vld [vmem:[%s1331_s0 + $0x60] sm:$0xff]  ;;  %v38_v54 = vld [vmem:[%s1331_s0 + $0x88] sm:$0xff]  ;;  %v51_v56 = vld [vmem:[%s1331_s0 + $0xf0] sm:$0xff] }
  0x1c   :  { %680 = vmatmul.msk.f32.gmra.mxu1 %vm82_vm1, %v24_v24  ;;  %148 = vmatpush.msra.mxu0 %v55_v25  ;;  %v49_v55 = vld [vmem:[%s1331_s0 + $0xe0] sm:$0xff] }
  0x1d   :  { %708 = vmatpush.msra.mxu2 %v55_v25  ;;  %689 = vmatmul.msk.f32.gmra.mxu3 %vm82_vm1, %v42_v27  ;;  %v1007_v59 = vld [vmem:[%s1333_s2] ss:$0 sm:$0xff] }
  0x1e   :  { %149 = vmatpush.msra.mxu0 %v54_v26 }
  0x1f   :  { %709 = vmatpush.msra.mxu2 %v54_v26 }
  0x20   :  { %150 = vmatpush.msra.mxu0 %v53_v28 }
  0x21   :  { %710 = vmatpush.msra.mxu2 %v53_v28  ;;  %151 = vmatmul.f32.vlgmr.msra.gmra.mxu0 %v21_v29 }
  0x22   :  { %172 = vmatmul.f32.vlgmr.msra.gmra.mxu2 %v35_v30 }
  0x24   :  { %681 = vmatmul.msk.f32.gmra.mxu1 %vm82_vm1, %v26_v31 }
  0x25   :  { %690 = vmatmul.msk.f32.gmra.mxu3 %vm82_vm1, %v44_v32 }
  0x29   :  { %154 = vmatmul.f32.gmra.mxu0 %v23_v33 }
  0x2a   :  { %175 = vmatmul.f32.gmra.mxu2 %v37_v34 }
  0x2c   :  { %682 = vmatmul.msk.f32.gmra.mxu1 %vm82_vm1, %v28_v35 }
  0x2d   :  { %691 = vmatmul.msk.f32.gmra.mxu3 %vm82_vm1, %v46_v36 }
  0x31   :  { %157 = vmatmul.f32.gmra.mxu0 %v25_v37 }
  0x32   :  { %178 = vmatmul.f32.gmra.mxu2 %v39_v38 }
  0x34   :  { %683 = vmatmul.msk.f32.gmra.mxu1 %vm82_vm1, %v30_v39 }
  0x35   :  { %692 = vmatmul.msk.f32.gmra.mxu3 %vm82_vm1, %v48_v40 }
  0x39   :  { %160 = vmatmul.f32.gmra.mxu0 %v27_v41 }
  0x3a   :  { %181 = vmatmul.f32.gmra.mxu2 %v41_v42 }
  0x3c   :  { %684 = vmatmul.msk.f32.gmra.mxu1 %vm82_vm1, %v32_v43 }
  0x3d   :  { %693 = vmatmul.msk.f32.gmra.mxu3 %vm82_vm1, %v50_v44 }
  0x41   :  { %163 = vmatmul.f32.gmra.mxu0 %v29_v45 }
  0x42   :  { %184 = vmatmul.f32.gmra.mxu2 %v43_v46 }
  0x44   :  { %685 = vmatmul.msk.f32.gmra.mxu1 %vm82_vm1, %v34_v47 }
  0x45   :  { %694 = vmatmul.msk.f32.gmra.mxu3 %vm82_vm1, %v52_v48 }
  0x49   :  { %166 = vmatmul.f32.gmra.mxu0 %v31_v49 }
  0x4a   :  { %187 = vmatmul.f32.gmra.mxu2 %v45_v50 }
  0x4c   :  { %686 = vmatmul.msk.f32.gmra.mxu1 %vm82_vm1, %v36_v51 }
  0x51   :  { %169 = vmatmul.f32.gmra.mxu0 %v33_v52 }
  0x52   :  { %190 = vmatmul.f32.gmra.mxu2 %v47_v53 }
  0x54   :  { %687 = vmatmul.msk.f32.gmra.mxu1 %vm82_vm1, %v38_v54 }
  0x5a   :  { %193 = vmatmul.f32.gmra.mxu2 %v49_v55 }
  0x62   :  { %196 = vmatmul.f32.gmra.mxu2 %v51_v56 }
  0x91   :  { %v217_v57 = vpop.f32.mrf.mxu1 }
  0x98   :  { %v244_v5 = vpop.f32.mrf.mxu3 }
  0x99   :  { %v220_v58 = vpop.f32.mrf.mxu1 }
  0x9e   :  { %v152_v60 = vpop.f32.mrf.mxu0 }
  0x9f   :  { %v153_v61 = vadd.f32 %v1007_v59, %v152_v60 }
  0xa0   :  { %v247_v11 = vpop.f32.mrf.mxu3 }
  0xa1   :  { %v223_v62 = vpop.f32.mrf.mxu1  ;;  %v1010_v63 = vadd.f32 %v217_v57, %v153_v61 }
  0xa3   :  { %265 = vadd.xlane.f32.xlu0 %v1010_v63 }
  0xa5   :  { %v173_v0 = vpop.f32.mrf.mxu2 }
  0xa6   :  { %v155_v1 = vpop.f32.mrf.mxu0  ;;  %v174_v31 = vadd.f32 %v1007_v59, %v173_v0 }
  0xa7   :  { %v156_v2 = vadd.f32 %v1007_v59, %v155_v1 }
  0xa8   :  { %v250_v20 = vpop.f32.mrf.mxu3 }
  0xa9   :  { %v226_v3 = vpop.f32.mrf.mxu1  ;;  %v1014_v4 = vadd.f32 %v220_v58, %v156_v2  ;;  %v329_v58 = vlaneseq }
  0xab   :  { %267 = vadd.xlane.f32.xlu0 %v1014_v4  ;;  %v1073_v60 = vand.u32 127, %v329_v58 }
  0xad   :  { %v176_v6 = vpop.f32.mrf.mxu2  ;;  %vm331_vm2 = vcmp.lt.s32.totalorder %v1073_v60, 32 }
  0xae   :  { %v158_v7 = vpop.f32.mrf.mxu0  ;;  %v177_v46 = vadd.f32 %v1007_v59, %v176_v6 }
  0xaf   :  { %v159_v8 = vadd.f32 %v1007_v59, %v158_v7 }
  0xb0   :  { %v253_v30 = vpop.f32.mrf.mxu3 }
  0xb1   :  { %v229_v9 = vpop.f32.mrf.mxu1  ;;  %v1018_v10 = vadd.f32 %v223_v62, %v159_v8 }
  0xb3   :  { %269 = vadd.xlane.f32.xlu1 %v1018_v10 }
  0xb5   :  { %v179_v12 = vpop.f32.mrf.mxu2 }
  0xb6   :  { %v180_v13 = vadd.f32 %v1007_v59, %v179_v12  ;;  %v161_v14 = vpop.f32.mrf.mxu0 }
  0xb7   :  { %v162_v15 = vadd.f32 %v1007_v59, %v161_v14 }
  0xb8   :  { %v1023_v16 = vadd.f32 %v244_v5, %v180_v13  ;;  %v256_v41 = vpop.f32.mrf.mxu3 }
  0xb9   :  { %v232_v17 = vpop.f32.mrf.mxu1  ;;  %v1025_v18 = vadd.f32 %v226_v3, %v162_v15 }
  0xba   :  { %283 = vadd.xlane.f32.xlu0 %v1023_v16 }
  0xbb   :  { %271 = vadd.xlane.f32.xlu1 %v1025_v18 }
  0xbd   :  { %v182_v19 = vpop.f32.mrf.mxu2 }
  0xbe   :  { %v183_v21 = vadd.f32 %v1007_v59, %v182_v19  ;;  %v164_v22 = vpop.f32.mrf.mxu0 }
  0xbf   :  { %v165_v23 = vadd.f32 %v1007_v59, %v164_v22 }
  0xc0   :  { %v1031_v24 = vadd.f32 %v247_v11, %v183_v21  ;;  %v259_v50 = vpop.f32.mrf.mxu3 }
  0xc1   :  { %v235_v25 = vpop.f32.mrf.mxu1  ;;  %v1033_v26 = vadd.f32 %v229_v9, %v165_v23 }
  0xc3   :  { %273 = vadd.xlane.f32.xlu2 %v1033_v26  ;;  %285 = vadd.xlane.f32.xlu1 %v1031_v24 }
  0xc5   :  { %v185_v27 = vpop.f32.mrf.mxu2 }
  0xc6   :  { %v186_v28 = vadd.f32 %v1007_v59, %v185_v27  ;;  %v167_v29 = vpop.f32.mrf.mxu0 }
  0xc7   :  { %v168_v35 = vadd.f32 %v1007_v59, %v167_v29 }
  0xc8   :  { %v1039_v32 = vadd.f32 %v250_v20, %v186_v28  ;;  %v262_v55 = vpop.f32.mrf.mxu3 }
  0xc9   :  { %v238_v33 = vpop.f32.mrf.mxu1  ;;  %v1049_v40 = vadd.f32 %v232_v17, %v168_v35 }
  0xca   :  { %v1041_v34 = vadd.f32 %v238_v33, %v174_v31 }
  0xcb   :  { %287 = vadd.xlane.f32.xlu2 %v1039_v32 }
  0xcc   :  { %279 = vadd.xlane.f32.xlu1 %v1041_v34 }
  0xcd   :  { %v188_v36 = vpop.f32.mrf.mxu2 }
  0xce   :  { %v189_v37 = vadd.f32 %v1007_v59, %v188_v36  ;;  %v170_v39 = vpop.f32.mrf.mxu0 }
  0xcf   :  { %v171_v42 = vadd.f32 %v1007_v59, %v170_v39 }
  0xd0   :  { %v1047_v38 = vadd.f32 %v253_v30, %v189_v37 }
  0xd1   :  { %v241_v44 = vpop.f32.mrf.mxu1  ;;  %v1058_v48 = vadd.f32 %v235_v25, %v171_v42 }
  0xd2   :  { %289 = vadd.xlane.f32.xlu0 %v1047_v38  ;;  %v1060_v49 = vadd.f32 %v241_v44, %v177_v46 }
  0xd3   :  { %275 = vadd.xlane.f32.xlu2 %v1049_v40 }
  0xd5   :  { %v191_v43 = vpop.f32.mrf.mxu2 }
  0xd6   :  { %v192_v45 = vadd.f32 %v1007_v59, %v191_v43 }
  0xd8   :  { %v1056_v47 = vadd.f32 %v256_v41, %v192_v45 }
  0xda   :  { %291 = vadd.xlane.f32.xlu1 %v1056_v47  ;;  %277 = vadd.xlane.f32.xlu0 %v1058_v48 }
  0xdb   :  { %281 = vadd.xlane.f32.xlu2 %v1060_v49 }
  0xdd   :  { %v194_v51 = vpop.f32.mrf.mxu2 }
  0xde   :  { %v195_v52 = vadd.f32 %v1007_v59, %v194_v51 }
  0xe0   :  { %v1066_v53 = vadd.f32 %v259_v50, %v195_v52 }
  0xe3   :  { %293 = vadd.xlane.f32.xlu2 %v1066_v53 }
  0xe5   :  { %v197_v54 = vpop.f32.mrf.mxu2 }
  0xe6   :  { %v198_v56 = vadd.f32 %v1007_v59, %v197_v54 }
  0xe8   :  { %v1070_v57 = vadd.f32 %v262_v55, %v198_v56 }
  0xea   :  { %295 = vadd.xlane.f32.xlu0 %v1070_v57 }
 0x116   :  { %v266_v61 = vpop.xlane.xlu0 %265 }
 0x117   :  { %v297_v62 = vmul.f32 0.03125, %v266_v61 }
 0x119   :  { %v313_v0 = vsub.f32 %v1010_v63, %v297_v62 }
 0x11b   :  { %v1079_v1 = vsel %vm331_vm2, %v313_v0, 0.0 }
 0x11c   :  { %v348_v59 = vmul.f32 %v1079_v1, %v1079_v1 }
 0x11e   :  { %364 = vadd.xlane.f32.xlu1 %v348_v59  ;;  %v268_v2 = vpop.xlane.xlu0 %267 }
 0x11f   :  { %v298_v3 = vmul.f32 0.03125, %v268_v2 }
 0x121   :  { %v314_v5 = vsub.f32 %v1014_v4, %v298_v3 }
 0x123   :  { %v1086_v6 = vsel %vm331_vm2, %v314_v5, 0.0 }
 0x124   :  { %v349_v7 = vmul.f32 %v1086_v6, %v1086_v6 }
 0x126   :  { %v270_v63 = vpop.xlane.xlu1 %269  ;;  %366 = vadd.xlane.f32.xlu2 %v349_v7 }
 0x127   :  { %v299_v8 = vmul.f32 0.03125, %v270_v63 }
 0x129   :  { %v315_v9 = vsub.f32 %v1018_v10, %v299_v8 }
 0x12b   :  { %v1093_v11 = vsel %vm331_vm2, %v315_v9, 0.0 }
 0x12c   :  { %v350_v12 = vmul.f32 %v1093_v11, %v1093_v11 }
 0x12d   :  { %v284_v4 = vpop.xlane.xlu0 %283 }
 0x12e   :  { %v306_v13 = vmul.f32 0.03125, %v284_v4  ;;  %v272_v14 = vpop.xlane.xlu1 %271  ;;  %368 = vadd.xlane.f32.xlu0 %v350_v12 }
 0x12f   :  { %v300_v17 = vmul.f32 0.03125, %v272_v14 }
 0x130   :  { %v322_v15 = vsub.f32 %v1023_v16, %v306_v13 }
 0x131   :  { %v316_v20 = vsub.f32 %v1025_v18, %v300_v17 }
 0x132   :  { %v1100_v19 = vsel %vm331_vm2, %v322_v15, 0.0 }
 0x133   :  { %v357_v10 = vmul.f32 %v1100_v19, %v1100_v19  ;;  %v1107_v25 = vsel %vm331_vm2, %v316_v20, 0.0 }
 0x134   :  { %v351_v28 = vmul.f32 %v1107_v25, %v1107_v25 }
 0x135   :  { %382 = vadd.xlane.f32.xlu1 %v357_v10 }
 0x136   :  { %v274_v21 = vpop.xlane.xlu2 %273  ;;  %v286_v22 = vpop.xlane.xlu1 %285 }
 0x137   :  { %v307_v23 = vmul.f32 0.03125, %v286_v22  ;;  %v301_v27 = vmul.f32 0.03125, %v274_v21 }
 0x139   :  { %v323_v16 = vsub.f32 %v1031_v24, %v307_v23  ;;  %v317_v30 = vsub.f32 %v1033_v26, %v301_v27 }
 0x13b   :  { %v1114_v29 = vsel %vm331_vm2, %v323_v16, 0.0  ;;  %v1122_v37 = vsel %vm331_vm2, %v317_v30, 0.0 }
 0x13c   :  { %v358_v18 = vmul.f32 %v1114_v29, %v1114_v29  ;;  %v352_v26 = vmul.f32 %v1122_v37, %v1122_v37 }
 0x13d   :  { %370 = vadd.xlane.f32.xlu1 %v351_v28 }
 0x13e   :  { %v288_v31 = vpop.xlane.xlu2 %287  ;;  %384 = vadd.xlane.f32.xlu2 %v358_v18 }
 0x13f   :  { %v308_v33 = vmul.f32 0.03125, %v288_v31  ;;  %v280_v35 = vpop.xlane.xlu1 %279 }
 0x140   :  { %v304_v24 = vmul.f32 0.03125, %v280_v35 }
 0x141   :  { %v324_v36 = vsub.f32 %v1039_v32, %v308_v33 }
 0x142   :  { %v320_v42 = vsub.f32 %v1041_v34, %v304_v24 }
 0x143   :  { %v1126_v39 = vsel %vm331_vm2, %v324_v36, 0.0 }
 0x144   :  { %v359_v41 = vmul.f32 %v1126_v39, %v1126_v39  ;;  %v1137_v51 = vsel %vm331_vm2, %v320_v42, 0.0 }
 0x145   :  { %v290_v43 = vpop.xlane.xlu0 %289 }
 0x146   :  { %v309_v44 = vmul.f32 0.03125, %v290_v43  ;;  %v276_v32 = vpop.xlane.xlu2 %275  ;;  %386 = vadd.xlane.f32.xlu0 %v359_v41  ;;  %372 = vadd.xlane.f32.xlu2 %v352_v26  ;;  %v1191_v26 = vld [vmem:[%s1334_s3] ss:$0 sm:$0xff]  ;;  %s784_s3 = smov [#allocation2]  }
 0x147   :  { %v302_v45 = vmul.f32 0.03125, %v276_v32 }
 0x148   :  { %v325_v46 = vsub.f32 %v1047_v38, %v309_v44  ;;  %v1196_v44 = vld [vmem:[%s1335_s4] ss:$0 sm:$0xff]  ;;  %s664_s4 = sshll.u32 %s784_s3, 4  ;;  %s665_s4 = int_to_ptr.vmem [resolvable:$true] %s664_s4 }
 0x149   :  { %v318_v50 = vsub.f32 %v1049_v40, %v302_v45  ;;  %v355_v40 = vmul.f32 %v1137_v51, %v1137_v51 }
 0x14a   :  { %v1141_v52 = vsel %vm331_vm2, %v325_v46, 0.0 }
 0x14b   :  { %v360_v34 = vmul.f32 %v1141_v52, %v1141_v52  ;;  %v1147_v54 = vsel %vm331_vm2, %v318_v50, 0.0 }
 0x14c   :  { %v353_v38 = vmul.f32 %v1147_v54, %v1147_v54 }
 0x14d   :  { %v292_v55 = vpop.xlane.xlu1 %291  ;;  %388 = vadd.xlane.f32.xlu1 %v360_v34  ;;  %v278_v56 = vpop.xlane.xlu0 %277 }
 0x14e   :  { %v310_v58 = vmul.f32 0.03125, %v292_v55  ;;  %v303_v61 = vmul.f32 0.03125, %v278_v56  ;;  %v282_v62 = vpop.xlane.xlu2 %281  ;;  %374 = vadd.xlane.f32.xlu0 %v353_v38  ;;  %378 = vadd.xlane.f32.xlu2 %v355_v40 }
 0x14f   :  { %v305_v0 = vmul.f32 0.03125, %v282_v62 }
 0x150   :  { %v326_v59 = vsub.f32 %v1056_v47, %v310_v58  ;;  %v319_v2 = vsub.f32 %v1058_v48, %v303_v61 }
 0x151   :  { %v321_v3 = vsub.f32 %v1060_v49, %v305_v0 }
 0x152   :  { %v1158_v5 = vsel %vm331_vm2, %v319_v2, 0.0  ;;  %v1162_v7 = vsel %vm331_vm2, %v326_v59, 0.0 }
 0x153   :  { %v354_v63 = vmul.f32 %v1158_v5, %v1158_v5  ;;  %v1168_v8 = vsel %vm331_vm2, %v321_v3, 0.0  ;;  %v361_v48 = vmul.f32 %v1162_v7, %v1162_v7 }
 0x154   :  { %v356_v47 = vmul.f32 %v1168_v8, %v1168_v8 }
 0x155   :  { %376 = vadd.xlane.f32.xlu1 %v354_v63 }
 0x156   :  { %v294_v49 = vpop.xlane.xlu2 %293  ;;  %380 = vadd.xlane.f32.xlu0 %v356_v47  ;;  %390 = vadd.xlane.f32.xlu2 %v361_v48 }
 0x157   :  { %v311_v9 = vmul.f32 0.03125, %v294_v49 }
 0x159   :  { %v327_v12 = vsub.f32 %v1066_v53, %v311_v9 }
 0x15b   :  { %v1177_v4 = vsel %vm331_vm2, %v327_v12, 0.0 }
 0x15c   :  { %v362_v13 = vmul.f32 %v1177_v4, %v1177_v4 }
 0x15d   :  { %v296_v14 = vpop.xlane.xlu0 %295 }
 0x15e   :  { %v312_v15 = vmul.f32 0.03125, %v296_v14  ;;  %392 = vadd.xlane.f32.xlu0 %v362_v13 }
 0x160   :  { %v328_v17 = vsub.f32 %v1070_v57, %v312_v15 }
 0x162   :  { %v1184_v10 = vsel %vm331_vm2, %v328_v17, 0.0 }
 0x163   :  { %v363_v20 = vmul.f32 %v1184_v10, %v1184_v10 }
 0x165   :  { %394 = vadd.xlane.f32.xlu1 %v363_v20 }
 0x191   :  { %v365_v53 = vpop.xlane.xlu1 %364 }
 0x192   :  { %v396_v21 = vmul.f32 0.03125, %v365_v53 }
 0x194   :  { %v412_v22 = vadd.f32 1e-05, %v396_v21 }
 0x196   :  { %726 = vrsqrt.f32 %v412_v22  ;;  %vm434_vm4 = vweird.f32 %v412_v22 }
 0x199   :  { %v367_v23 = vpop.xlane.xlu2 %366 }
 0x19a   :  { %v397_v27 = vmul.f32 0.03125, %v367_v23 }
 0x19c   :  { %v727_v16 = vpop.eup %726  ;;  %v413_v28 = vadd.f32 1e-05, %v397_v27 }
 0x19d   :  { %v429_v18 = vmul.f32 %v727_v16, %v412_v22  ;;  %vm435_vm3 = vweird.f32 %v727_v16 }
 0x19e   :  { %728 = vrsqrt.f32 %v413_v28  ;;  %vm436_vm5 = vmor %vm434_vm4, %vm435_vm3  ;;  %vm444_vm7 = vweird.f32 %v413_v28 }
 0x19f   :  { %v430_v30 = vmul.f32 %v727_v16, %v429_v18 }
 0x1a1   :  { %v431_v57 = vmul.f32 0.5, %v430_v30  ;;  %v369_v31 = vpop.xlane.xlu0 %368 }
 0x1a2   :  { %v398_v60 = vmul.f32 0.03125, %v369_v31 }
 0x1a3   :  { %v432_v33 = vsub.f32 1.5, %v431_v57 }
 0x1a4   :  { %v729_v35 = vpop.eup %728  ;;  %v414_v36 = vadd.f32 1e-05, %v398_v60 }
 0x1a5   :  { %v433_v24 = vmul.f32 %v727_v16, %v432_v33  ;;  %v439_v41 = vmul.f32 %v729_v35, %v413_v28  ;;  %vm445_vm6 = vweird.f32 %v729_v35 }
 0x1a6   :  { %730 = vrsqrt.f32 %v414_v36  ;;  %vm446_vm8 = vmor %vm444_vm7, %vm445_vm6  ;;  %vm454_vm10 = vweird.f32 %v414_v36 }
 0x1a7   :  { %v437_v42 = vsel %vm436_vm5, %v727_v16, %v433_v24  ;;  %v440_v43 = vmul.f32 %v729_v35, %v439_v41 }
 0x1a8   :  { %v588_v32 = vmul.f32 %v437_v42, %v1079_v1  ;;  %v383_v45 = vpop.xlane.xlu1 %382 }
 0x1a9   :  { %v441_v46 = vmul.f32 0.5, %v440_v43  ;;  %v405_v50 = vmul.f32 0.03125, %v383_v45 }
 0x1aa   :  { %v608_v34 = vmul.f32 %v1191_v26, %v588_v32 }
 0x1ab   :  { %v442_v38 = vsub.f32 1.5, %v441_v46  ;;  %v421_v40 = vadd.f32 1e-05, %v405_v50 }
 0x1ac   :  { %v731_v55 = vpop.eup %730  ;;  %v628_v56 = vadd.f32 %v1196_v44, %v608_v34 }
 0x1ad   :  { %v443_v58 = vmul.f32 %v729_v35, %v442_v38  ;;  %v449_v61 = vmul.f32 %v731_v55, %v414_v36  ;;  %732 = vrsqrt.f32 %v421_v40  ;;  %vm455_vm9 = vweird.f32 %v731_v55 }
 0x1ae   :  { %644 = vst [vmem:[#allocation2] sm:$0xff] %v628_v56  ;;  %vm456_vm11 = vmor %vm454_vm10, %vm455_vm9  ;;  %vm524_vm13 = vweird.f32 %v421_v40 }
 0x1af   :  { %v447_v62 = vsel %vm446_vm8, %v729_v35, %v443_v58  ;;  %v450_v0 = vmul.f32 %v731_v55, %v449_v61 }
 0x1b0   :  { %v589_v1 = vmul.f32 %v447_v62, %v1086_v6  ;;  %v371_v59 = vpop.xlane.xlu1 %370 }
 0x1b1   :  { %v451_v2 = vmul.f32 0.5, %v450_v0  ;;  %v399_v3 = vmul.f32 0.03125, %v371_v59  ;;  %v385_v63 = vpop.xlane.xlu2 %384 }
 0x1b2   :  { %v609_v47 = vmul.f32 %v1191_v26, %v589_v1  ;;  %v406_v48 = vmul.f32 0.03125, %v385_v63 }
 0x1b3   :  { %v733_v49 = vpop.eup %732  ;;  %v452_v9 = vsub.f32 1.5, %v451_v2  ;;  %v415_v12 = vadd.f32 1e-05, %v399_v3 }
 0x1b4   :  { %v629_v13 = vadd.f32 %v1196_v44, %v609_v47  ;;  %v519_v14 = vmul.f32 %v733_v49, %v421_v40  ;;  %v1204_v15 = vadd.f32 1e-05, %v406_v48  ;;  %vm525_vm12 = vweird.f32 %v733_v49 }
 0x1b5   :  { %v453_v17 = vmul.f32 %v731_v55, %v452_v9  ;;  %734 = vrsqrt.f32 %v415_v12  ;;  %vm526_vm14 = vmor %vm524_vm13, %vm525_vm12  ;;  %vm464_vm1 = vweird.f32 %v415_v12 }
 0x1b6   :  { %645 = vst [vmem:[#allocation2 + $0x8] sm:$0xff] %v629_v13  ;;  %v520_v6 = vmul.f32 %v733_v49, %v519_v14  ;;  %736 = vrsqrt.f32 %v1204_v15  ;;  %vm534_vm3 = vweird.f32 %v1204_v15 }
 0x1b7   :  { %v457_v20 = vsel %vm456_vm11, %v731_v55, %v453_v17 }
 0x1b8   :  { %v590_v53 = vmul.f32 %v457_v20, %v1093_v11  ;;  %v521_v21 = vmul.f32 0.5, %v520_v6 }
 0x1b9   :  { %v373_v22 = vpop.xlane.xlu2 %372  ;;  %v387_v23 = vpop.xlane.xlu0 %386 }
 0x1ba   :  { %v610_v27 = vmul.f32 %v1191_v26, %v590_v53  ;;  %v522_v16 = vsub.f32 1.5, %v521_v21  ;;  %v400_v28 = vmul.f32 0.03125, %v373_v22  ;;  %v407_v18 = vmul.f32 0.03125, %v387_v23 }
 0x1bb   :  { %v735_v30 = vpop.eup %734 }
 0x1bc   :  { %v737_v57 = vpop.eup %736  ;;  %v630_v31 = vadd.f32 %v1196_v44, %v610_v27  ;;  %v523_v60 = vmul.f32 %v733_v49, %v522_v16  ;;  %v459_v33 = vmul.f32 %v735_v30, %v415_v12  ;;  %v1211_v11 = vadd.f32 1e-05, %v400_v28 }
 0x1bd   :  { %v529_v35 = vmul.f32 %v737_v57, %v1204_v15  ;;  %v1213_v36 = vadd.f32 1e-05, %v407_v18  ;;  %vm465_vm15 = vweird.f32 %v735_v30  ;;  %vm535_vm0 = vweird.f32 %v737_v57 }
 0x1be   :  { %646 = vst [vmem:[#allocation2 + $0x10] sm:$0xff] %v630_v31  ;;  %v527_v24 = vsel %vm526_vm14, %v733_v49, %v523_v60  ;;  %v460_v41 = vmul.f32 %v735_v30, %v459_v33  ;;  %738 = vrsqrt.f32 %v1211_v11  ;;  %vm466_vm2 = vmor %vm464_vm1, %vm465_vm15  ;;  %vm474_vm5 = vweird.f32 %v1211_v11 }
 0x1bf   :  { %v597_v42 = vmul.f32 %v527_v24, %v1100_v19  ;;  %v530_v43 = vmul.f32 %v737_v57, %v529_v35  ;;  %740 = vrsqrt.f32 %v1213_v36  ;;  %vm536_vm4 = vmor %vm534_vm3, %vm535_vm0  ;;  %vm544_vm6 = vweird.f32 %v1213_v36 }
 0x1c0   :  { %v461_v32 = vmul.f32 0.5, %v460_v41  ;;  %v389_v45 = vpop.xlane.xlu1 %388 }
 0x1c1   :  { %v617_v46 = vmul.f32 %v1191_v26, %v597_v42  ;;  %v531_v50 = vmul.f32 0.5, %v530_v43  ;;  %v408_v34 = vmul.f32 0.03125, %v389_v45  ;;  %v379_v38 = vpop.xlane.xlu2 %378  ;;  %v375_v40 = vpop.xlane.xlu0 %374 }
 0x1c2   :  { %v462_v55 = vsub.f32 1.5, %v461_v32  ;;  %v403_v56 = vmul.f32 0.03125, %v379_v38  ;;  %v401_v58 = vmul.f32 0.03125, %v375_v40 }
 0x1c3   :  { %v637_v61 = vadd.f32 %v1196_v44, %v617_v46  ;;  %v532_v19 = vsub.f32 1.5, %v531_v50  ;;  %v1220_v62 = vadd.f32 1e-05, %v408_v34 }
 0x1c4   :  { %v463_v0 = vmul.f32 %v735_v30, %v462_v55  ;;  %v1222_v1 = vadd.f32 1e-05, %v403_v56  ;;  %v1224_v59 = vadd.f32 1e-05, %v401_v58  ;;  %v739_v2 = vpop.eup %738 }
 0x1c5   :  { %653 = vst [vmem:[#allocation2 + $0x48] sm:$0xff] %v637_v61  ;;  %v533_v3 = vmul.f32 %v737_v57, %v532_v19  ;;  %742 = vrsqrt.f32 %v1220_v62  ;;  %v741_v63 = vpop.eup %740  ;;  %v469_v48 = vmul.f32 %v739_v2, %v1211_v11  ;;  %vm475_vm7 = vweird.f32 %v739_v2 }
 0x1c6   :  { %v467_v47 = vsel %vm466_vm2, %v735_v30, %v463_v0  ;;  %744 = vrsqrt.f32 %v1222_v1  ;;  %v539_v12 = vmul.f32 %v741_v63, %v1213_v36  ;;  %vm554_vm8 = vweird.f32 %v1220_v62  ;;  %vm476_vm10 = vmor %vm474_vm5, %vm475_vm7 }
 0x1c7   :  { %v591_v49 = vmul.f32 %v467_v47, %v1107_v25  ;;  %v537_v9 = vsel %vm536_vm4, %v737_v57, %v533_v3  ;;  %v470_v14 = vmul.f32 %v739_v2, %v469_v48  ;;  %746 = vrsqrt.f32 %v1224_v59 }
 0x1c8   :  { %v598_v13 = vmul.f32 %v537_v9, %v1114_v29  ;;  %v377_v15 = vpop.xlane.xlu1 %376  ;;  %v540_v6 = vmul.f32 %v741_v63, %v539_v12  ;;  %vm545_vm9 = vweird.f32 %v741_v63  ;;  %vm504_vm11 = vweird.f32 %v1222_v1 }
 0x1c9   :  { %v611_v17 = vmul.f32 %v1191_v26, %v591_v49  ;;  %v402_v20 = vmul.f32 0.03125, %v377_v15  ;;  %v391_v53 = vpop.xlane.xlu2 %390  ;;  %v381_v21 = vpop.xlane.xlu0 %380  ;;  %v471_v23 = vmul.f32 0.5, %v470_v14  ;;  %vm546_vm12 = vmor %vm544_vm6, %vm545_vm9  ;;  %vm484_vm2 = vweird.f32 %v1224_v59 }
 0x1ca   :  { %v618_v22 = vmul.f32 %v1191_v26, %v598_v13  ;;  %v409_v25 = vmul.f32 0.03125, %v391_v53  ;;  %v541_v16 = vmul.f32 0.5, %v540_v6  ;;  %v404_v43 = vmul.f32 0.03125, %v381_v21 }
 0x1cb   :  { %v1237_v27 = vpop.eup %742  ;;  %v631_v29 = vadd.f32 %v1196_v44, %v611_v17  ;;  %v1241_v28 = vadd.f32 1e-05, %v402_v20  ;;  %v472_v57 = vsub.f32 1.5, %v471_v23 }
 0x1cc   :  { %v1243_v18 = vpop.eup %744  ;;  %v638_v30 = vadd.f32 %v1196_v44, %v618_v22  ;;  %v549_v31 = vmul.f32 %v1237_v27, %v1220_v62  ;;  %v542_v60 = vsub.f32 1.5, %v541_v16  ;;  %v1255_v42 = vadd.f32 1e-05, %v409_v25 }
 0x1cd   :  { %647 = vst [vmem:[#allocation2 + $0x18] sm:$0xff] %v631_v29  ;;  %v499_v33 = vmul.f32 %v1243_v18, %v1222_v1  ;;  %748 = vrsqrt.f32 %v1241_v28  ;;  %v1252_v35 = vpop.eup %746  ;;  %v473_v24 = vmul.f32 %v739_v2, %v472_v57  ;;  %vm555_vm13 = vweird.f32 %v1237_v27 }
 0x1ce   :  { %654 = vst [vmem:[#allocation2 + $0x50] sm:$0xff] %v638_v30  ;;  %v550_v41 = vmul.f32 %v1237_v27, %v549_v31  ;;  %v543_v32 = vmul.f32 %v741_v63, %v542_v60  ;;  %v479_v46 = vmul.f32 %v1252_v35, %v1224_v59  ;;  %750 = vrsqrt.f32 %v1255_v42  ;;  %vm556_vm0 = vmor %vm554_vm8, %vm555_vm13 }
 0x1cf   :  { %v500_v45 = vmul.f32 %v1243_v18, %v499_v33  ;;  %v477_v50 = vsel %vm476_vm10, %v739_v2, %v473_v24  ;;  %vm505_vm14 = vweird.f32 %v1243_v18  ;;  %v1272_v19 = vadd.f32 1e-05, %v404_v43 }
 0x1d0   :  { %v551_v34 = vmul.f32 0.5, %v550_v41  ;;  %v592_v11 = vmul.f32 %v477_v50, %v1122_v37  ;;  %v547_v38 = vsel %vm546_vm12, %v741_v63, %v543_v32  ;;  %v480_v55 = vmul.f32 %v1252_v35, %v479_v46  ;;  %vm506_vm1 = vmor %vm504_vm11, %vm505_vm14 }
 0x1d1   :  { %v501_v40 = vmul.f32 0.5, %v500_v45  ;;  %v393_v56 = vpop.xlane.xlu0 %392  ;;  %v599_v58 = vmul.f32 %v547_v38, %v1126_v39  ;;  %vm485_vm15 = vweird.f32 %v1252_v35  ;;  %752 = vrsqrt.f32 %v1272_v19 }
 0x1d2   :  { %v552_v61 = vsub.f32 1.5, %v551_v34  ;;  %v612_v0 = vmul.f32 %v1191_v26, %v592_v11  ;;  %v481_v3 = vmul.f32 0.5, %v480_v55  ;;  %v410_v48 = vmul.f32 0.03125, %v393_v56  ;;  %vm486_vm3 = vmor %vm484_vm2, %vm485_vm15 }
 0x1d3   :  { %v749_v36 = vpop.eup %748  ;;  %v502_v2 = vsub.f32 1.5, %v501_v40  ;;  %v619_v37 = vmul.f32 %v1191_v26, %v599_v58  ;;  %vm494_vm5 = vweird.f32 %v1241_v28  ;;  %vm564_vm8 = vweird.f32 %v1255_v42 }
 0x1d4   :  { %v553_v63 = vmul.f32 %v1237_v27, %v552_v61  ;;  %v489_v47 = vmul.f32 %v749_v36, %v1241_v28  ;;  %v632_v39 = vadd.f32 %v1196_v44, %v612_v0  ;;  %v482_v9 = vsub.f32 1.5, %v481_v3  ;;  %v751_v12 = vpop.eup %750 }
 0x1d5   :  { %v503_v49 = vmul.f32 %v1243_v18, %v502_v2  ;;  %v639_v13 = vadd.f32 %v1196_v44, %v619_v37  ;;  %v559_v20 = vmul.f32 %v751_v12, %v1255_v42  ;;  %vm495_vm4 = vweird.f32 %v749_v36 }
 0x1d6   :  { %v557_v14 = vsel %vm556_vm0, %v1237_v27, %v553_v63  ;;  %v490_v15 = vmul.f32 %v749_v36, %v489_v47  ;;  %648 = vst [vmem:[#allocation2 + $0x20] sm:$0xff] %v632_v39  ;;  %v483_v6 = vmul.f32 %v1252_v35, %v482_v9  ;;  %v426_v21 = vadd.f32 1e-05, %v410_v48  ;;  %vm496_vm6 = vmor %vm494_vm5, %vm495_vm4 }
 0x1d7   :  { %v600_v62 = vmul.f32 %v557_v14, %v1141_v52  ;;  %v507_v17 = vsel %vm506_vm1, %v1243_v18, %v503_v49  ;;  %655 = vst [vmem:[#allocation2 + $0x58] sm:$0xff] %v639_v13  ;;  %v560_v23 = vmul.f32 %v751_v12, %v559_v20  ;;  %vm565_vm7 = vweird.f32 %v751_v12 }
 0x1d8   :  { %v595_v53 = vmul.f32 %v507_v17, %v1137_v51  ;;  %v491_v1 = vmul.f32 0.5, %v490_v15  ;;  %v395_v59 = vpop.xlane.xlu1 %394  ;;  %v487_v52 = vsel %vm486_vm3, %v1252_v35, %v483_v6  ;;  %754 = vrsqrt.f32 %v426_v21  ;;  %v753_v51 = vpop.eup %752  ;;  %vm566_vm9 = vmor %vm564_vm8, %vm565_vm7 }
 0x1d9   :  { %v620_v22 = vmul.f32 %v1191_v26, %v600_v62  ;;  %v411_v25 = vmul.f32 0.03125, %v395_v59  ;;  %v593_v29 = vmul.f32 %v487_v52, %v1147_v54  ;;  %v561_v30 = vmul.f32 0.5, %v560_v23 }
 0x1da   :  { %v615_v27 = vmul.f32 %v1191_v26, %v595_v53  ;;  %v492_v16 = vsub.f32 1.5, %v491_v1  ;;  %v509_v35 = vmul.f32 %v753_v51, %v1272_v19  ;;  %vm515_vm10 = vweird.f32 %v753_v51 }
 0x1db   :  { %v640_v18 = vadd.f32 %v1196_v44, %v620_v22  ;;  %v427_v57 = vadd.f32 1e-05, %v411_v25  ;;  %v613_v60 = vmul.f32 %v1191_v26, %v593_v29  ;;  %v562_v54 = vsub.f32 1.5, %v561_v30 }
 0x1dc   :  { %v635_v31 = vadd.f32 %v1196_v44, %v615_v27  ;;  %v493_v33 = vmul.f32 %v749_v36, %v492_v16  ;;  %v510_v28 = vmul.f32 %v753_v51, %v509_v35  ;;  %vm514_vm11 = vweird.f32 %v1272_v19 }
 0x1dd   :  { %656 = vst [vmem:[#allocation2 + $0x60] sm:$0xff] %v640_v18  ;;  %756 = vrsqrt.f32 %v427_v57  ;;  %v633_v24 = vadd.f32 %v1196_v44, %v613_v60  ;;  %v563_v32 = vmul.f32 %v751_v12, %v562_v54  ;;  %vm516_vm12 = vmor %vm514_vm11, %vm515_vm10  ;;  %vm574_vm14 = vweird.f32 %v426_v21 }
 0x1de   :  { %651 = vst [vmem:[#allocation2 + $0x38] sm:$0xff] %v635_v31  ;;  %v497_v41 = vsel %vm496_vm6, %v749_v36, %v493_v33  ;;  %v755_v45 = vpop.eup %754  ;;  %v511_v46 = vmul.f32 0.5, %v510_v28  ;;  %vm584_vm1 = vweird.f32 %v427_v57 }
 0x1df   :  { %v594_v43 = vmul.f32 %v497_v41, %v1158_v5  ;;  %649 = vst [vmem:[#allocation2 + $0x28] sm:$0xff] %v633_v24  ;;  %v567_v34 = vsel %vm566_vm9, %v751_v12, %v563_v32  ;;  %v569_v11 = vmul.f32 %v755_v45, %v426_v21  ;;  %vm575_vm13 = vweird.f32 %v755_v45 }
 0x1e0   :  { %v601_v38 = vmul.f32 %v567_v34, %v1162_v7  ;;  %v512_v40 = vsub.f32 1.5, %v511_v46  ;;  %vm576_vm15 = vmor %vm574_vm14, %vm575_vm13 }
 0x1e1   :  { %v614_v50 = vmul.f32 %v1191_v26, %v594_v43  ;;  %v570_v58 = vmul.f32 %v755_v45, %v569_v11 }
 0x1e2   :  { %v621_v5 = vmul.f32 %v1191_v26, %v601_v38  ;;  %v513_v61 = vmul.f32 %v753_v51, %v512_v40 }
 0x1e3   :  { %v757_v55 = vpop.eup %756  ;;  %v634_v56 = vadd.f32 %v1196_v44, %v614_v50  ;;  %v571_v36 = vmul.f32 0.5, %v570_v58 }
 0x1e4   :  { %v579_v42 = vmul.f32 %v757_v55, %v427_v57  ;;  %v641_v0 = vadd.f32 %v1196_v44, %v621_v5  ;;  %v517_v2 = vsel %vm516_vm12, %v753_v51, %v513_v61  ;;  %vm585_vm0 = vweird.f32 %v757_v55 }
 0x1e5   :  { %650 = vst [vmem:[#allocation2 + $0x30] sm:$0xff] %v634_v56  ;;  %v596_v7 = vmul.f32 %v517_v2, %v1168_v8  ;;  %v572_v37 = vsub.f32 1.5, %v571_v36  ;;  %vm586_vm2 = vmor %vm584_vm1, %vm585_vm0 }
 0x1e6   :  { %v580_v3 = vmul.f32 %v757_v55, %v579_v42  ;;  %657 = vst [vmem:[#allocation2 + $0x68] sm:$0xff] %v641_v0 }
 0x1e7   :  { %v616_v47 = vmul.f32 %v1191_v26, %v596_v7  ;;  %v573_v48 = vmul.f32 %v755_v45, %v572_v37 }
 0x1e8   :  { %v581_v63 = vmul.f32 0.5, %v580_v3 }
 0x1e9   :  { %v636_v39 = vadd.f32 %v1196_v44, %v616_v47  ;;  %v577_v49 = vsel %vm576_vm15, %v755_v45, %v573_v48 }
 0x1ea   :  { %v582_v19 = vsub.f32 1.5, %v581_v63  ;;  %v602_v9 = vmul.f32 %v577_v49, %v1177_v4 }
 0x1eb   :  { %652 = vst [vmem:[#allocation2 + $0x40] sm:$0xff] %v636_v39 }
 0x1ec   :  { %v583_v12 = vmul.f32 %v757_v55, %v582_v19  ;;  %v622_v8 = vmul.f32 %v1191_v26, %v602_v9 }
 0x1ee   :  { %v587_v13 = vsel %vm586_vm2, %v757_v55, %v583_v12  ;;  %v642_v15 = vadd.f32 %v1196_v44, %v622_v8 }
 0x1ef   :  { %v603_v14 = vmul.f32 %v587_v13, %v1184_v10 }
 0x1f0   :  { %658 = vst [vmem:[#allocation2 + $0x70] sm:$0xff] %v642_v15 }
 0x1f1   :  { %v623_v62 = vmul.f32 %v1191_v26, %v603_v14 }
 0x1f3   :  { %v643_v4 = vadd.f32 %v1196_v44, %v623_v62 }
 0x1f5   :  { %659 = vst [vmem:[#allocation2 + $0x78] sm:$0xff] %v643_v4 }
 0x1f6   :  { %672 = dma.vmem_to_hbm [thread:$0]  %s665_s4, 2048, %s667_s10, [#allocation3], %s785_s11, %s785_s11, %s786_s12  }
 0x1f7   :  { %782 = dma.done.wait [#allocation3], 2048  }
 0x1f8   :  { %783 = vsyncadd [#allocation3], 4294965248 }
 0x1f9   :  { %677 = vsyncpa [#allocation3], 1 }

</bundles_post_ra>
